<compile_context>
chip_gen: v7x
topology: tpu7x:2x2x1
jax: 0.10.0
libtpu: 0.0.40
codegen_flags: <defaults>
</compile_context>

<pallas_src>
import functools
import math

import jax
import jax.numpy as jnp
from jax.experimental import pallas as pl
from jax.experimental.pallas import tpu as pltpu


def _cdiv(a, b):
    return -(-a // b)


def _mse_deviation_kernel(x_ref, t_ref, mean_ref, inv_std_ref, out_ref,
                          mse_acc, dev_acc, *, inv_n, factor_over_n):
    j = pl.program_id(1)          # row-tile loop within this core's row-half

    @pl.when(j == 0)
    def _():
        mse_acc[...] = jnp.zeros_like(mse_acc)
        dev_acc[...] = jnp.zeros_like(dev_acc)

    x = x_ref[...].astype(jnp.float32)              # (tile_rows, W)
    t = t_ref[...].astype(jnp.float32)              # (tile_rows, W)
    mean = mean_ref[...].astype(jnp.float32)        # (1, W) broadcast over rows
    inv_std = inv_std_ref[...].astype(jnp.float32)  # (1, W)

    diff = x - t                                    # MSE term
    dev = jnp.abs((x - mean) * inv_std)             # unscaled deviation term

    tr, w = x.shape
    # Fold the tile's 8-row groups with VPU adds; keep vreg-aligned (8, W)
    # partial sums so the accumulator stays tiny and VMEM goes to input blocks.
    mse_acc[...] += jnp.sum((diff * diff).reshape(tr // 8, 8, w), axis=0)
    dev_acc[...] += jnp.sum(dev.reshape(tr // 8, 8, w), axis=0)

    @pl.when(j == pl.num_programs(1) - 1)
    def _():
        partial = (jnp.sum(mse_acc[...]) * inv_n
                   + jnp.sum(dev_acc[...]) * factor_over_n)
        out_ref[...] = jnp.zeros_like(out_ref) + partial


def mse_with_deviation_loss(x, target, mean_pose, std_pose, factor=1.0,
                            num_splits=2, target_block_bytes=4 << 20,
                            vmem_limit_bytes=32 << 20):
    """x, target: (B, T, D); mean_pose, std_pose: (D,). Returns scalar f32.

    Implements the default (cmp_type='pos') forward of MSEWithDeviationLoss.
    """
    B, T, D = x.shape
    rows = B * T
    n_true = rows * D

    # ---- lane-dense packing: (rows, D) -> (rows/k, k*D), with k*D % 128 == 0 ----
    k = 128 // math.gcd(D, 128)
    while k * D < 512:
        k *= 2
    W = k * D

    # ---- tile size: largest row tile (multiple of 8) within the VMEM budget ----
    itemsize = x.dtype.itemsize
    t_from_vmem = max(8, (target_block_bytes // (W * itemsize)) // 8 * 8)
    packed_rows = _cdiv(rows, k)
    per_split = _cdiv(packed_rows, num_splits)
    t_needed = max(8, _cdiv(per_split, 8) * 8)
    tile_rows = min(t_from_vmem, t_needed)
    tiles_per_split = _cdiv(per_split, tile_rows)
    padded_packed_rows = num_splits * tiles_per_split * tile_rows
    padded_rows = padded_packed_rows * k

    # ---- wrapper-side padding: padded rows have x == target == mean_pose, so
    # both the MSE and deviation terms contribute exactly zero; n stays true. ----
    mean_row = mean_pose.reshape(1, D).astype(jnp.float32)
    x2 = x.reshape(rows, D)
    t2 = target.reshape(rows, D)
    pad = padded_rows - rows
    if pad > 0:
        pad_block = jnp.broadcast_to(mean_row, (pad, D))
        x2 = jnp.concatenate([x2, pad_block.astype(x.dtype)], axis=0)
        t2 = jnp.concatenate([t2, pad_block.astype(target.dtype)], axis=0)
    x2 = x2.reshape(padded_packed_rows, W)
    t2 = t2.reshape(padded_packed_rows, W)

    mean_k = jnp.tile(mean_row, (1, k))                                    # (1, W)
    inv_std_k = jnp.tile(1.0 / std_pose.reshape(1, D).astype(jnp.float32), (1, k))

    kernel = functools.partial(
        _mse_deviation_kernel,
        inv_n=1.0 / n_true,
        factor_over_n=abs(float(factor)) / n_true)

    row_spec = pl.BlockSpec((tile_rows, W),
                            lambda c, j: (c * tiles_per_split + j, 0))
    stat_spec = pl.BlockSpec((1, W), lambda c, j: (0, 0))

    out = pl.pallas_call(
        kernel,
        out_shape=jax.ShapeDtypeStruct((num_splits * 8, 128), jnp.float32),
        grid_spec=pltpu.PrefetchScalarGridSpec(
            num_scalar_prefetch=0,
            grid=(num_splits, tiles_per_split),
            in_specs=[row_spec, row_spec, stat_spec, stat_spec],
            out_specs=pl.BlockSpec((8, 128), lambda c, j: (c, 0)),
            scratch_shapes=[pltpu.VMEM((8, W), jnp.float32),
                            pltpu.VMEM((8, W), jnp.float32)],
        ),
        compiler_params=pltpu.CompilerParams(
            dimension_semantics=("parallel", "arbitrary"),
            vmem_limit_bytes=vmem_limit_bytes),
    )(x2, t2, mean_k, inv_std_k)

    # One scaled partial per core (row 0 of each (8, 128) output block).
    return jnp.sum(out[::8, 0])


def _reference(x, target, mean_pose, std_pose, factor=1.0):
    mse = jnp.mean((x - target) ** 2)
    mean_t = mean_pose.reshape(1, 1, -1)
    std_t = std_pose.reshape(1, 1, -1)
    normalization = jnp.mean(jnp.abs((x - mean_t) / std_t * factor))
    return mse + normalization


if __name__ == "__main__":
    key = jax.random.PRNGKey(0)
    B, T, D = 2, 8, 32

    k1, k2 = jax.random.split(key)
    x = jax.random.normal(k1, (B, T, D), dtype=jnp.float32) * 1.5
    target = jax.random.normal(k2, (B, T, D), dtype=jnp.float32) * 1.5

    # Deterministic synthetic per-feature stats (stand-in for stats_train.pkl).
    # TODO(synk): real module loads angle mean/stddev from stats_train.pkl.
    feat = jnp.arange(D, dtype=jnp.float32)
    mean_pose = 0.1 * jnp.sin(feat)
    std_pose = 0.5 + 0.02 * feat + 1e-8           # module adds 1e-8 to stddev

    loss = mse_with_deviation_loss(x, target, mean_pose, std_pose, factor=1.0)
    loss = jax.block_until_ready(loss)

    ref = _reference(x, target, mean_pose, std_pose, factor=1.0)
    assert jnp.allclose(loss, ref, rtol=1e-5, atol=1e-5), (loss, ref)

    print("KERNEL_OK")
</pallas_src>

<mosaic_0001>
module attributes {stable_mosaic.version = 11 : i64} {
  func.func @_mse_deviation_kernel(%arg0: i32, %arg1: i32, %arg2: memref<8x512xf32, #tpu.memory_space<vmem>>, %arg3: memref<8x512xf32, #tpu.memory_space<vmem>>, %arg4: memref<1x512xf32, #tpu.memory_space<vmem>>, %arg5: memref<1x512xf32, #tpu.memory_space<vmem>>, %arg6: memref<8x128xf32, #tpu.memory_space<vmem>>, %arg7: memref<8x512xf32, #tpu.memory_space<vmem>>, %arg8: memref<8x512xf32, #tpu.memory_space<vmem>>) attributes {dimension_semantics = [#tpu.dimension_semantics<parallel>, #tpu.dimension_semantics<arbitrary>], iteration_bounds = array<i64: 2, 1>, scalar_prefetch = 0 : i64, scratch_operands = 2 : i64, tpu.core_type = #tpu.core_type<tc>, window_params = [{transform_indices = @transform_0, window_bounds = array<i64: 8, 512>}, {transform_indices = @transform_1, window_bounds = array<i64: 8, 512>}, {pipeline_mode = #tpu.pipeline_mode<synchronous>, transform_indices = @transform_2, window_bounds = array<i64: 1, 512>}, {pipeline_mode = #tpu.pipeline_mode<synchronous>, transform_indices = @transform_3, window_bounds = array<i64: 1, 512>}, {transform_indices = @transform_4, window_bounds = array<i64: 8, 128>}]} {
    %c0_i32 = arith.constant 0 : i32
    %0 = arith.cmpi eq, %arg1, %c0_i32 : i32
    %1 = arith.extui %0 : i1 to i32
    %c0_i32_0 = arith.constant 0 : i32
    %2 = arith.cmpi ne, %1, %c0_i32_0 : i32
    scf.if %2 {
      %cst_19 = arith.constant 0.000000e+00 : f32
      %27 = vector.broadcast %cst_19 : f32 to vector<8x512xf32>
      %c0_20 = arith.constant 0 : index
      %c0_21 = arith.constant 0 : index
      %28 = vector.load %arg7[%c0_20, %c0_21] : memref<8x512xf32, #tpu.memory_space<vmem>>, vector<8x512xf32>
      tpu.vector_store %arg7[%c0_20, %c0_21], %27 {strides = array<i32>} : memref<8x512xf32, #tpu.memory_space<vmem>>, vector<8x512xf32>,
      %cst_22 = arith.constant 0.000000e+00 : f32
      %29 = vector.broadcast %cst_22 : f32 to vector<8x512xf32>
      %c0_23 = arith.constant 0 : index
      %c0_24 = arith.constant 0 : index
      %30 = vector.load %arg8[%c0_23, %c0_24] : memref<8x512xf32, #tpu.memory_space<vmem>>, vector<8x512xf32>
      tpu.vector_store %arg8[%c0_23, %c0_24], %29 {strides = array<i32>} : memref<8x512xf32, #tpu.memory_space<vmem>>, vector<8x512xf32>,
    } else {
    }
    %c0 = arith.constant 0 : index
    %c0_1 = arith.constant 0 : index
    %3 = vector.load %arg2[%c0, %c0_1] : memref<8x512xf32, #tpu.memory_space<vmem>>, vector<8x512xf32>
    %c0_2 = arith.constant 0 : index
    %c0_3 = arith.constant 0 : index
    %4 = vector.load %arg3[%c0_2, %c0_3] : memref<8x512xf32, #tpu.memory_space<vmem>>, vector<8x512xf32>
    %c0_4 = arith.constant 0 : index
    %c0_5 = arith.constant 0 : index
    %5 = vector.load %arg4[%c0_4, %c0_5] : memref<1x512xf32, #tpu.memory_space<vmem>>, vector<1x512xf32>
    %c0_6 = arith.constant 0 : index
    %c0_7 = arith.constant 0 : index
    %6 = vector.load %arg5[%c0_6, %c0_7] : memref<1x512xf32, #tpu.memory_space<vmem>>, vector<1x512xf32>
    %7 = arith.subf %3, %4 : vector<8x512xf32>
    %8 = vector.broadcast %5 : vector<1x512xf32> to vector<8x512xf32>
    %9 = arith.subf %3, %8 : vector<8x512xf32>
    %10 = vector.broadcast %6 : vector<1x512xf32> to vector<8x512xf32>
    %11 = arith.mulf %9, %10 : vector<8x512xf32>
    %12 = math.absf %11 : vector<8x512xf32>
    %c0_8 = arith.constant 0 : index
    %c0_9 = arith.constant 0 : index
    %13 = vector.load %arg7[%c0_8, %c0_9] : memref<8x512xf32, #tpu.memory_space<vmem>>, vector<8x512xf32>
    %14 = arith.mulf %7, %7 : vector<8x512xf32>
    %15 = vector.shape_cast %14 : vector<8x512xf32> to vector<1x8x512xf32>
    %cst = arith.constant dense<0.000000e+00> : vector<8x512xf32>
    %16 = vector.multi_reduction <add>, %15, %cst [0] : vector<1x8x512xf32> to vector<8x512xf32>
    %17 = arith.addf %13, %16 : vector<8x512xf32>
    %c0_10 = arith.constant 0 : index
    %c0_11 = arith.constant 0 : index
    %18 = vector.load %arg7[%c0_10, %c0_11] : memref<8x512xf32, #tpu.memory_space<vmem>>, vector<8x512xf32>
    tpu.vector_store %arg7[%c0_10, %c0_11], %17 {strides = array<i32>} : memref<8x512xf32, #tpu.memory_space<vmem>>, vector<8x512xf32>,
    %c0_12 = arith.constant 0 : index
    %c0_13 = arith.constant 0 : index
    %19 = vector.load %arg8[%c0_12, %c0_13] : memref<8x512xf32, #tpu.memory_space<vmem>>, vector<8x512xf32>
    %20 = vector.shape_cast %12 : vector<8x512xf32> to vector<1x8x512xf32>
    %cst_14 = arith.constant dense<0.000000e+00> : vector<8x512xf32>
    %21 = vector.multi_reduction <add>, %20, %cst_14 [0] : vector<1x8x512xf32> to vector<8x512xf32>
    %22 = arith.addf %19, %21 : vector<8x512xf32>
    %c0_15 = arith.constant 0 : index
    %c0_16 = arith.constant 0 : index
    %23 = vector.load %arg8[%c0_15, %c0_16] : memref<8x512xf32, #tpu.memory_space<vmem>>, vector<8x512xf32>
    tpu.vector_store %arg8[%c0_15, %c0_16], %22 {strides = array<i32>} : memref<8x512xf32, #tpu.memory_space<vmem>>, vector<8x512xf32>,
    %c0_i32_17 = arith.constant 0 : i32
    %24 = arith.cmpi eq, %arg1, %c0_i32_17 : i32
    %25 = arith.extui %24 : i1 to i32
    %c0_i32_18 = arith.constant 0 : i32
    %26 = arith.cmpi ne, %25, %c0_i32_18 : i32
    scf.if %26 {
      %c0_19 = arith.constant 0 : index
      %c0_20 = arith.constant 0 : index
      %27 = vector.load %arg7[%c0_19, %c0_20] : memref<8x512xf32, #tpu.memory_space<vmem>>, vector<8x512xf32>
      %28 = vector.shape_cast %27 : vector<8x512xf32> to vector<1x8x512xf32>
      %cst_21 = arith.constant dense<0.000000e+00> : vector<1xf32>
      %29 = vector.multi_reduction <add>, %28, %cst_21 [1, 2] : vector<1x8x512xf32> to vector<1xf32>
      %30 = vector.shape_cast %29 : vector<1xf32> to vector<1x1x1xf32>
      %31 = vector.extract %30[0, 0, 0] : f32 from vector<1x1x1xf32>
      %cst_22 = arith.constant 0.001953125 : f32
      %32 = arith.mulf %31, %cst_22 : f32
      %c0_23 = arith.constant 0 : index
      %c0_24 = arith.constant 0 : index
      %33 = vector.load %arg8[%c0_23, %c0_24] : memref<8x512xf32, #tpu.memory_space<vmem>>, vector<8x512xf32>
      %34 = vector.shape_cast %33 : vector<8x512xf32> to vector<1x8x512xf32>
      %cst_25 = arith.constant dense<0.000000e+00> : vector<1xf32>
      %35 = vector.multi_reduction <add>, %34, %cst_25 [1, 2] : vector<1x8x512xf32> to vector<1xf32>
      %36 = vector.shape_cast %35 : vector<1xf32> to vector<1x1x1xf32>
      %37 = vector.extract %36[0, 0, 0] : f32 from vector<1x1x1xf32>
      %cst_26 = arith.constant 0.001953125 : f32
      %38 = arith.mulf %37, %cst_26 : f32
      %39 = arith.addf %32, %38 : f32
      %cst_27 = arith.constant 0.000000e+00 : f32
      %40 = vector.broadcast %cst_27 : f32 to vector<8x128xf32>
      %41 = vector.broadcast %39 : f32 to vector<8x128xf32>
      %42 = arith.addf %40, %41 : vector<8x128xf32>
      %c0_28 = arith.constant 0 : index
      %c0_29 = arith.constant 0 : index
      %43 = vector.load %arg6[%c0_28, %c0_29] : memref<8x128xf32, #tpu.memory_space<vmem>>, vector<8x128xf32>
      tpu.vector_store %arg6[%c0_28, %c0_29], %42 {strides = array<i32>} : memref<8x128xf32, #tpu.memory_space<vmem>>, vector<8x128xf32>,
    } else {
    }
    return
  }
  func.func @transform_0(%arg0: i32, %arg1: i32) -> (i32, i32) {
    %c1_i32 = arith.constant 1 : i32
    %0 = arith.muli %arg0, %c1_i32 : i32
    %1 = arith.addi %0, %arg1 : i32
    %c0_i32 = arith.constant 0 : i32
    %c0_i32_0 = arith.constant 0 : i32
    return %1, %c0_i32 : i32, i32
  }
  func.func @transform_1(%arg0: i32, %arg1: i32) -> (i32, i32) {
    %c1_i32 = arith.constant 1 : i32
    %0 = arith.muli %arg0, %c1_i32 : i32
    %1 = arith.addi %0, %arg1 : i32
    %c0_i32 = arith.constant 0 : i32
    %c0_i32_0 = arith.constant 0 : i32
    return %1, %c0_i32 : i32, i32
  }
  func.func @transform_2(%arg0: i32, %arg1: i32) -> (i32, i32) {
    %c0_i32 = arith.constant 0 : i32
    %c0_i32_0 = arith.constant 0 : i32
    %c0_i32_1 = arith.constant 0 : i32
    return %c0_i32, %c0_i32_0 : i32, i32
  }
  func.func @transform_3(%arg0: i32, %arg1: i32) -> (i32, i32) {
    %c0_i32 = arith.constant 0 : i32
    %c0_i32_0 = arith.constant 0 : i32
    %c0_i32_1 = arith.constant 0 : i32
    return %c0_i32, %c0_i32_0 : i32, i32
  }
  func.func @transform_4(%arg0: i32, %arg1: i32) -> (i32, i32) {
    %c0_i32 = arith.constant 0 : i32
    %c0_i32_0 = arith.constant 0 : i32
    return %arg0, %c0_i32 : i32, i32
  }
}

</mosaic_0001>

<bundles_post_ra>
// kernel: tpu_custom_call.1
= control target key start
LH: loop header
LB: loop body
LE: loop exit
PB: predicated region body
PF: predicated region fallthrough
CT: control target
= control target key end

     0   :  { %9 = vsyncpa [#allocation5], 0  ;;  %s1040_s0 = inlined_call_operand.hbm [shape: f32[16,512], index: 0, kind: input, shape index: {}]   ;;  %s1041_s1 = inlined_call_operand.hbm [shape: f32[16,512], index: 1, kind: input, shape index: {}]   ;;  %s1042_s2 = inlined_call_operand.vmem [shape: f32[1,512], index: 2, kind: input, shape index: {}]   ;;  %s1043_s3 = inlined_call_operand.vmem [shape: f32[1,512], index: 3, kind: input, shape index: {}]   ;;  %s1044_s4 = inlined_call_operand.hbm [shape: f32[16,128], index: 4, kind: output, shape index: {}]  }
   0x1   :  { %11 = vsyncpa [#allocation5 + $0x1], 0 }
   0x2   :  { %12 = vsyncpa [#allocation8], 0 }
   0x3   :  { %14 = vsyncpa [#allocation8 + $0x1], 0 }
   0x4   :  { %15 = vsyncpa [#allocation6], 0 }
   0x5   :  { %17 = vsyncpa [#allocation6 + $0x1], 0  ;;  %s813_s15 = smov 0   ;;  %s815_s16 = smov 0  }
   0x6   :  { %s817_s17 = smov 0   ;;  %s819_s18 = smov 0  }
   0x7   :  { %s821_s19 = smov 0   ;;  %s823_s20 = smov 0  }
   0x8 LB: > { %s546_s21 = sadd.s32 4294967295, %s783_s20   ;;  %s547_s22 = sadd.s32 4294967294, %s783_s20   ;;  %s783_s20 = sphi %s823_s20, %s23_s20   ;;  %s779_s19 = sphi %s821_s19, %s1064_s19   ;;  %s775_s18 = sphi %s819_s18, %s1063_s18   ;;  %s771_s17 = sphi %s817_s17, %s1062_s17   ;;  %s767_s16 = sphi %s815_s16, %s1061_s16   ;;  %s763_s15 = sphi %s813_s15, %s1060_s15  }
   0x9   : > { %s35_s23 = sadd.s32 1, %s779_s19  ;;  %s44_s24 = sadd.s32 1, %s771_s17 }
   0xa   : > { %p37_p0 = scmp.ge.s32.totalorder %s35_s23, 2  ;;  %p51_p1 = scmp.ne.s32.totalorder %s771_s17, %s767_s16 }
   0xb   : > { %p52_p2 = scmp.eq.s32.totalorder %s783_s20, 0  ;;  %p57_p3 = scmp.ne.s32.totalorder %s767_s16, %s763_s15 }
   0xc   : > { %s1066_s23 = smov (%p37_p0, %s35_s23), 0  ;;  %p58_p5 = scmp.eq.s32.totalorder %s546_s21, 0 }
   0xd   : > { %p854_p4 = por %p52_p2, %p51_p1  ;;  %s41_s26 = ssub.s32 %s779_s19, %s1066_s23 }
   0xe   : > { %p151_p6 = scmp.eq.s32.totalorder %s546_s21, 1  ;;  %p42_p7 = scmp.eq.s32.totalorder %s41_s26, 0 }
   0xf   : > { %p860_p8 = por %p58_p5, %p57_p3  ;;  %p157_p10 = scmp.eq.s32.totalorder %s547_s22, 1 }
  0x10   : > { %p864_p9 = por %p151_p6, %p51_p1  ;;  %p587_p13 = scmp.lt.s32.totalorder %s783_s20, 2 }
  0x11   : > { %s1048_s27 = scalar_select %p860_p8, 1, 0 }
  0x12   : > { %s1049_s28 = scalar_select %p864_p9, 1, 0 }
  0x13   : > { %s869_s29 = scalar_select %p42_p7, %s771_s17, %s44_s24  }
  0x14   : > { %p871_p11 = por %p157_p10, %p57_p3  ;;  %s878_s5 = sand.u32 1, %s771_s17  }
  0x15   : > { %s550_s6 = sshll.u32 %s878_s5, 5  ;;  %s564_s7 = sshll.u32 %s779_s19, 9 }
  0x16   : > { %s1050_s30 = scalar_select %p871_p11, 1, 0 }
  0x17   : > { %s887_s10 = scalar_lea.hbm %s1040_s0, %s564_s7  ;;  %s187_s11 = scalar_lea.vmem [#allocation4], %s550_s6 }
  0x18   : > { %s196_s12 = sshll.u32 %s187_s11, 4  ;;  %p895_p0 = pnand %p587_p13, %p854_p4  ;;  %s891_s12 = int_to_ptr.vmem [resolvable:$true] %s196_s12 }
  0x19   : > { %s184_s14 = scalar_lea.sflag [#allocation5], %s878_s5  ;;  %s637_s21 = scalar_lea.hbm %s887_s10, 512 }
  0x1a   : > { %p638_p3 = scmp.ne.s32.totalorder %s887_s10, %s637_s21  ;;  %p639_p5 = pneg %p895_p0 }
  0x1b   : > { %s642_s25 = scalar_lea.hbm %s1040_s0, 1024  ;;  %p643_p4 = scmp.lt.u32.totalorder %s887_s10, %s1040_s0 }
  0x1c   : > { %p640_p6 = pnand %p639_p5, %p638_p3  ;;  %p644_p10 = scmp.lt.u32.totalorder %s642_s25, %s637_s21 }
  0x1d   : > { %p646_p12 = scmp.lt.u32.totalorder %s637_s21, %s887_s10 }
  0x1e   : > { %p641_p7 = pneg %p640_p6  ;;  %p645_p13 = por %p644_p10, %p643_p4 }
  0x20   : > { %p647_p1 = por %p646_p12, %p645_p13 }
  0x22   : > { %p648_p2 = pnand %p647_p1, %p641_p7 }
  0x24   : > { %651 = shalt.err (!%p648_p2)
}
  0x25   : > { %s652_s9 = scalar_lea.vmem %s891_s12, 512  ;;  %s785_s11 = smov [#allocation4]  }
  0x26   : > { %p653_p3 = scmp.ne.s32.totalorder %s891_s12, %s652_s9  ;;  %s657_s22 = sshll.u32 %s785_s11, 4  ;;  %s658_s22 = int_to_ptr.vmem [resolvable:$false] %s657_s22 }
  0x27   : > { %s659_s24 = scalar_lea.vmem %s658_s22, 1024  ;;  %p660_p9 = scmp.lt.s32.totalorder %s891_s12, %s658_s22 }
  0x28   : > { %p655_p6 = pnand %p653_p3, %p639_p5  ;;  %p661_p4 = scmp.lt.s32.totalorder %s659_s24, %s652_s9 }
  0x2a   : > { %p656_p11 = pneg %p655_p6  ;;  %p662_p10 = por %p661_p4, %p660_p9 }
  0x2c   : > { %p663_p12 = pnand %p662_p10, %p656_p11 }
  0x2e   : > { %666 = shalt.err (!%p663_p12)
}
  0x2f   : > { %579 = dma.hbm_to_vmem [thread:$0]  (!%p895_p0), %s887_s10, 512, %s891_s12, %s184_s14  }
  0x30   : > { %p1052_p1 = scmp.lt.s32.totalorder %s783_s20, 3  ;;  %p1053_p2 = scmp.ge.s32.totalorder %s783_s20, 1 }
  0x31   : > { %s940_s8 = scalar_lea.hbm %s1041_s1, %s564_s7  ;;  %s207_s9 = scalar_lea.vmem [#allocation7], %s550_s6 }
  0x32   : > { %p931_p7 = pnand %p1053_p2, %p1052_p1  ;;  %s216_s11 = sshll.u32 %s207_s9, 4  ;;  %s217_s11 = int_to_ptr.vmem [resolvable:$true] %s216_s11 }
  0x33   : > { %s204_s10 = scalar_lea.sflag [#allocation8], %s878_s5  ;;  %s667_s12 = scalar_lea.hbm %s940_s8, 512 }
  0x34   : > { %s1054_s21 = scalar_select %p931_p7, 1, 0 }
  0x35   : > { %p668_p9 = scmp.ne.s32.totalorder %s940_s8, %s667_s12  ;;  %s672_s7 = scalar_lea.hbm %s1041_s1, 1024 }
  0x36   : > { %p673_p3 = scmp.lt.u32.totalorder %s940_s8, %s1041_s1  ;;  %p674_p6 = scmp.lt.u32.totalorder %s672_s7, %s667_s12 }
  0x37   : > { %p670_p11 = pnand %p668_p9, %p639_p5  ;;  %p676_p10 = scmp.lt.u32.totalorder %s667_s12, %s940_s8 }
  0x38   : > { %p675_p4 = por %p674_p6, %p673_p3 }
  0x39   : > { %p671_p13 = pneg %p670_p11 }
  0x3a   : > { %p677_p12 = por %p676_p10, %p675_p4 }
  0x3c   : > { %p678_p1 = pnand %p677_p12, %p671_p13 }
  0x3e   : > { %681 = shalt.err (!%p678_p1)
}
  0x3f   : > { %s682_s5 = scalar_lea.vmem %s217_s11, 512  ;;  %s786_s6 = smov [#allocation7]  }
  0x40   : > { %p683_p2 = scmp.ne.s32.totalorder %s217_s11, %s682_s5  ;;  %s687_s26 = sshll.u32 %s786_s6, 4  ;;  %s688_s26 = int_to_ptr.vmem [resolvable:$false] %s687_s26 }
  0x41   : > { %s689_s9 = scalar_lea.vmem %s688_s26, 1024  ;;  %p690_p8 = scmp.lt.s32.totalorder %s217_s11, %s688_s26 }
  0x42   : > { %p685_p9 = pnand %p683_p2, %p639_p5  ;;  %p691_p7 = scmp.lt.s32.totalorder %s689_s9, %s682_s5 }
  0x44   : > { %p686_p11 = pneg %p685_p9  ;;  %p692_p3 = por %p691_p7, %p690_p8 }
  0x46   : > { %p693_p6 = pnand %p692_p3, %p686_p11 }
  0x48   : > { %696 = shalt.err (!%p693_p6)
}
  0x49   : > { %582 = dma.hbm_to_vmem [thread:$0]  (!%p895_p0), %s940_s8, 512, %s217_s11, %s204_s10  }
  0x4a   : > { %p1055_p13 = scmp.ne.s32.totalorder %s1054_s21, 0 }
  0x4b   : > { %s967_s12 = sand.u32 (!%p1055_p13), 1, %s767_s16   ;;  %p1056_p5 = scmp.ne.s32.totalorder (!%p1055_p13), %s1048_s27, 0 }
  0x4c   : > { %225 = sbr.rel (%p1055_p13) target bundleno = 329 (0x149), region = 36  ;;  %s557_s14 = sshll.u32 (!%p1055_p13), %s967_s12, 5 }
  0x4d   : > { %s228_s22 = scalar_lea.sflag (!%p1055_p13), [#allocation5], %s967_s12  ;;  %s231_s7 = scalar_lea.vmem (!%p1055_p13), [#allocation4], %s557_s14 }
  0x53   : > { %750 = dma.done.wait (%p1056_p5), %s228_s22, 512  }
  0x54   : > { %752 = vsyncadd (%p1056_p5), %s228_s22, 4294966784  ;;  %s237_s13 = scalar_lea.sflag [#allocation8], %s967_s12  ;;  %s240_s8 = scalar_lea.vmem [#allocation7], %s557_s14 }
  0x55   : > { %754 = dma.done.wait (%p1056_p5), %s237_s13, 512  }
  0x56   : > { %756 = vsyncadd (%p1056_p5), %s237_s13, 4294966784  ;;  %v299_v0 = vlaneseq  ;;  %v284_v4 = vld [vmem:[%s231_s7] sm:$0xff]  ;;  %v285_v5 = vld [vmem:[%s231_s7 + $0x8] sm:$0xff]  ;;  %s559_s24 = sshll.u32 %s967_s12, 3  ;;  %s561_s5 = sshll.u32 %s775_s18, 7 }
  0x57   : > { %v286_v6 = vld [vmem:[%s231_s7 + $0x10] sm:$0xff]  ;;  %v287_v9 = vld [vmem:[%s231_s7 + $0x18] sm:$0xff]  ;;  %v288_v10 = vld [vmem:[%s240_s8] sm:$0xff]  ;;  %s269_s14 = scalar_lea.vmem [#allocation9], %s559_s24  ;;  %s991_s21 = scalar_lea.hbm %s1044_s4, %s561_s5 }
  0x58   : > { %v300_v1 = vshrl.u32 %v299_v0, 7  ;;  %v289_v11 = vld [vmem:[%s240_s8 + $0x8] sm:$0xff]  ;;  %v290_v12 = vld [vmem:[%s240_s8 + $0x10] sm:$0xff]  ;;  %v291_v13 = vld [vmem:[%s240_s8 + $0x18] sm:$0xff]  ;;  %v294_v15 = vsub.f32 %v284_v4, %v288_v10  ;;  %s443_s22 = sshll.u32 %s269_s14, 4  ;;  %s430_s11 = scalar_lea.sflag [#allocation6], %s967_s12  ;;  %s993_s22 = int_to_ptr.vmem [resolvable:$true] %s443_s22 }
  0x59   : > { %v292_v14 = vld [vmem:[%s1042_s2] sm:$0xf]  ;;  %v295_v16 = vsub.f32 %v285_v5, %v289_v11  ;;  %v296_v17 = vsub.f32 %v286_v6, %v290_v12  ;;  %v297_v18 = vsub.f32 %v287_v9, %v291_v13  ;;  %s697_s18 = scalar_lea.vmem %s993_s22, 128  ;;  %p1057_p0 = scmp.ne.s32.totalorder %s1049_s28, 0 }
  0x5a   : > { %v301_v2 = vsub.s32 0, %v300_v1  ;;  %v305_v3 = vsub.s32 1, %v300_v1  ;;  %v309_v7 = vsub.s32 2, %v300_v1  ;;  %v313_v8 = vsub.s32 3, %v300_v1  ;;  %v293_v21 = vld [vmem:[%s1043_s3] sm:$0xf]  ;;  %p698_p8 = scmp.ne.s32.totalorder %s993_s22, %s697_s18 }
  0x5b   : > { %v356_v24 = vmul.f32 %v294_v15, %v294_v15  ;;  %v357_v25 = vmul.f32 %v295_v16, %v295_v16  ;;  %v358_v28 = vmul.f32 %v296_v17, %v296_v17  ;;  %v359_v29 = vmul.f32 %v297_v18, %v297_v18  ;;  %s787_s27 = smov [#allocation9]  }
  0x5c   : > { %v302_v19 = vrot.slane %v292_v14, %v301_v2  ;;  %v306_v20 = vrot.slane %v292_v14, %v305_v3  ;;  %v310_v22 = vrot.slane %v292_v14, %v309_v7  ;;  %v314_v23 = vrot.slane %v292_v14, %v313_v8  ;;  %p699_p7 = pnand %p698_p8, %p1057_p0  ;;  %s701_s10 = sshll.u32 %s787_s27, 4  ;;  %s702_s10 = int_to_ptr.vmem [resolvable:$false] %s701_s10 }
  0x5d   : > { %v395_v32 = vadd.f32 %v357_v25, %v356_v24  ;;  %v327_v33 = vrot.slane %v293_v21, %v301_v2  ;;  %v331_v34 = vrot.slane %v293_v21, %v305_v3  ;;  %v335_v35 = vrot.slane %v293_v21, %v309_v7  ;;  %s703_s24 = scalar_lea.vmem %s702_s10, 256  ;;  %p704_p10 = scmp.lt.s32.totalorder %s993_s22, %s702_s10 }
  0x5e   : > { %v319_v26 = vsub.f32 %v284_v4, %v302_v19  ;;  %v320_v27 = vsub.f32 %v285_v5, %v306_v20  ;;  %v321_v30 = vsub.f32 %v286_v6, %v310_v22  ;;  %v322_v31 = vsub.f32 %v287_v9, %v314_v23  ;;  %p700_p4 = pneg %p699_p7  ;;  %p705_p12 = scmp.lt.s32.totalorder %s703_s24, %s697_s18 }
  0x5f   : > { %v339_v36 = vrot.slane %v293_v21, %v313_v8  ;;  %v396_v37 = vadd.f32 %v395_v32, %v358_v28 }
  0x60   : > { %v344_v38 = vmul.f32 %v327_v33, %v319_v26  ;;  %v345_v39 = vmul.f32 %v331_v34, %v320_v27  ;;  %v346_v40 = vmul.f32 %v335_v35, %v321_v30  ;;  %p706_p1 = por %p705_p12, %p704_p10 }
  0x61   : > { %v347_v41 = vmul.f32 %v339_v36, %v322_v31  ;;  %v397_v42 = vadd.f32 %v396_v37, %v359_v29 }
  0x62   : > { %v348_v43 = vand.u32 2147483647, %v344_v38  ;;  %v349_v44 = vand.u32 2147483647, %v345_v39  ;;  %v350_v45 = vand.u32 2147483647, %v346_v40  ;;  %p707_p2 = pnand %p706_p1, %p700_p4 }
  0x63   : > { %398 = vadd.xlane.f32.xlu0 %v397_v42  ;;  %v351_v46 = vand.u32 2147483647, %v347_v41 }
  0x64   : > { %v412_v47 = vadd.f32 %v349_v44, %v348_v43 }
  0x66   : > { %v413_v48 = vadd.f32 %v412_v47, %v350_v45 }
  0x68   : > { %v414_v49 = vadd.f32 %v413_v48, %v351_v46 }
  0x6a   : > { %415 = vadd.xlane.f32.xlu0 %v414_v49 }
  0xf0   : > { %v399_v50 = vpop.xlane.xlu0 %398 }
  0xf1   : > { %v400_v51 = vrot.slane %v399_v50, 4 }
  0xf3   : > { %v401_v52 = vadd.f32 %v400_v51, %v399_v50 }
  0xf5   : > { %v402_v53 = vrot.slane %v401_v52, 2 }
  0xf7   : > { %v416_v54 = vpop.xlane.xlu0 %415  ;;  %v403_v55 = vadd.f32 %v402_v53, %v401_v52 }
  0xf8   : > { %v417_v56 = vrot.slane %v416_v54, 4 }
  0xf9   : > { %v404_v57 = vrot.slane %v403_v55, 1 }
  0xfa   : > { %v418_v58 = vadd.f32 %v417_v56, %v416_v54 }
  0xfb   : > { %v405_v59 = vadd.f32 %v404_v57, %v403_v55 }
  0xfc   : > { %v419_v60 = vrot.slane %v418_v58, 2 }
  0xfd   : > { %566 = vpush %v405_v59 }
  0xfe   : > { %v420_v61 = vadd.f32 %v419_v60, %v418_v58 }
 0x100   : > { %v421_v62 = vrot.slane %v420_v61, 1 }
 0x102   : > { %v422_v63 = vadd.f32 %v421_v62, %v420_v61 }
 0x104   : > { %568 = vpush %v422_v63 }
 0x12e   : > { %s567_s25 = spop %566 }
 0x12f   : > { %s407_s6 = smul.f32 0.001953125, %s567_s25 }
 0x135   : > { %s569_s26 = spop %568 }
 0x136   : > { %s424_s9 = smul.f32 0.001953125, %s569_s26 }
 0x138   : > { %s425_s7 = sadd.f32 %s424_s9, %s407_s6 }
 0x13a   : > { %v426_v0 = vstv %s425_s7 }
 0x13b   : > { %428 = vst [vmem:[%s269_s14] sm:$0xff] %v426_v0 }
 0x13c   : > { %710 = shalt.err (!%p707_p2)
}
 0x13d   : > { %s711_s12 = scalar_lea.hbm %s991_s21, 128  ;;  %s715_s6 = scalar_lea.hbm %s1044_s4, 256 }
 0x13e   : > { %p712_p9 = scmp.ne.s32.totalorder %s991_s21, %s711_s12  ;;  %p716_p6 = scmp.lt.u32.totalorder %s991_s21, %s1044_s4 }
 0x13f   : > { %p717_p13 = scmp.lt.u32.totalorder %s715_s6, %s711_s12  ;;  %p719_p8 = scmp.lt.u32.totalorder %s711_s12, %s991_s21 }
 0x140   : > { %p713_p11 = pnand %p712_p9, %p1057_p0 }
 0x141   : > { %p718_p5 = por %p717_p13, %p716_p6 }
 0x142   : > { %p714_p3 = pneg %p713_p11 }
 0x143   : > { %p720_p7 = por %p719_p8, %p718_p5 }
 0x145   : > { %p721_p4 = pnand %p720_p7, %p714_p3 }
 0x147   : > { %724 = shalt.err (!%p721_p4)
}
 0x148   : > { %574 = dma.vmem_to_hbm [thread:$0]  (%p1057_p0), %s993_s22, 128, %s991_s21, %s430_s11  }
 0x149 PF: > { %s455_s14 = sand.u32 1, %s763_s15   ;;  %p1058_p10 = scmp.ne.s32.totalorder %s1050_s30, 0 }
 0x14a   : > { %p1059_p12 = scmp.ge.s32.totalorder %s783_s20, 2  ;;  %s456_s7 = scalar_lea.sflag [#allocation6], %s455_s14 }
 0x14c   : > { %p584_p1 = pnand %p1059_p12, %p1058_p10 }
 0x14e   : > { %758 = dma.done.wait (!%p584_p1), %s456_s7, 128  }
 0x14f   : > { %760 = vsyncadd (!%p584_p1), %s456_s7, 4294967168  ;;  %s23_s20 = sadd.s32 1, %s783_s20   ;;  %s1060_s15 = smov %s767_s16 }
 0x150   : > { %p20_p2 = scmp.ge.s32.totalorder %s23_s20, 4   ;;  %s1061_s16 = smov %s771_s17 }
 0x151   : > { %s1062_s17 = smov %s869_s29  ;;  %s1063_s18 = smov %s779_s19 }
 0x152   : > { %s1064_s19 = smov %s1066_s23  ;;  %22 = sbr.rel (!%p20_p2) target bundleno = 8 (0x8), region = 102 }
 0x159   :  { %461 = vsyncpa [#allocation5], 1 }
 0x15a   :  { %463 = vsyncpa [#allocation5 + $0x1], 1 }
 0x15b   :  { %464 = vsyncpa [#allocation8], 1 }
 0x15c   :  { %466 = vsyncpa [#allocation8 + $0x1], 1 }
 0x15d   :  { %467 = vsyncpa [#allocation6], 1 }
 0x15e   :  { %469 = vsyncpa [#allocation6 + $0x1], 1 }

</bundles_post_ra>
